<compile_context>
chip_gen: v6e
topology: v6e:2x2x1
jax: 0.10.0
libtpu: 0.0.40
codegen_flags: <defaults>
</compile_context>

<pallas_src>
from functools import partial

import jax
import jax.numpy as jnp
from jax import lax
from jax.experimental import pallas as pl
from jax.experimental.pallas import tpu as pltpu


def lstm_last_kernel(x_ref, wih_ref, whh_ref, b_ref, out_ref, xw_ref):
    """x_ref: [T*B, D] bf16 time-major-flattened input (row t*B + b <-> (t, b)).
    wih_ref: [D, 4H] bf16, whh_ref: [H, 4H] bf16, b_ref: [1, 4H] f32,
    out_ref: [B, H] f32 (h_T), xw_ref: [T*B, 4H] f32 scratch.
    Gate column order is (i, f, o, g) — permuted in the wrapper."""
    TB, _ = x_ref.shape
    B, Hl = out_ref.shape
    T = TB // B
    H3 = 3 * Hl

    wih = wih_ref[...]                      # [D, 4H]  bf16
    whh = whh_ref[...]                      # [H, 4H]  bf16
    b = b_ref[...]                          # [1, 4H]  f32

    # One-shot input projection for all timesteps, bias folded in, f32 accumulate.
    xw_ref[...] = jnp.dot(x_ref[...], wih, preferred_element_type=jnp.float32) + b

    # ---- peeled t = 0 step: h0 = c0 = 0, so gates = xW[0], c = i*g, h = o*tanh(c) ----
    g0 = xw_ref[pl.ds(0, B), :]             # [B, 4H] f32
    s0 = jax.nn.sigmoid(g0[:, :H3])         # i | f | o in one sigmoid launch
    c0 = s0[:, 0:Hl] * jnp.tanh(g0[:, H3:])
    h0 = s0[:, 2 * Hl:H3] * jnp.tanh(c0)

    # ---- recurrence t = 1 .. T-1 (only the h-dependent matmul remains inside) ----
    def step(t, carry):
        h, c = carry
        gates = (xw_ref[pl.ds(t * B, B), :]
                 + jnp.dot(h.astype(whh.dtype), whh,
                           preferred_element_type=jnp.float32))     # [B, 4H] f32
        s = jax.nn.sigmoid(gates[:, :H3])   # i | f | o
        g_g = jnp.tanh(gates[:, H3:])
        c_new = s[:, Hl:2 * Hl] * c + s[:, 0:Hl] * g_g
        h_new = s[:, 2 * Hl:H3] * jnp.tanh(c_new)
        return (h_new, c_new)

    h_T, _ = lax.fori_loop(1, T, step, (h0, c0), unroll=True)
    out_ref[...] = h_T.astype(out_ref.dtype)


def prepare_lstm_params(params, hiddendim_lstm):
    """One-time weight prep: PyTorch (i,f,g,o) row-blocks -> (i,f,o,g), transpose to
    [in, 4H], cast matmul operands to bf16, fold the two biases. Do NOT call per-step."""
    H = hiddendim_lstm

    def permute(w):  # rows [i; f; g; o] -> [i; f; o; g]
        return jnp.concatenate([w[0:H], w[H:2 * H], w[3 * H:4 * H], w[2 * H:3 * H]], axis=0)

    wih_t = permute(params["w_ih"]).T.astype(jnp.bfloat16)                 # [D, 4H]
    whh_t = permute(params["w_hh"]).T.astype(jnp.bfloat16)                 # [H, 4H]
    bias = permute(params["b_ih"] + params["b_hh"]).reshape(1, -1).astype(jnp.float32)
    return wih_t, whh_t, bias


@partial(jax.jit, static_argnames=("num_layers", "hidden_size", "hiddendim_lstm"))
def lstm_pooling_v1_forward(hidden_states, wih_t, whh_t, bias,
                            num_layers, hidden_size, hiddendim_lstm):
    """hidden_states: list of (num_layers+1) arrays, each [B, S, hidden_size]."""
    # --- glue: exactly mirrors stack([:,0], dim=-1) then the row-major .view ---
    cls = jnp.stack([hidden_states[l][:, 0] for l in range(1, num_layers + 1)],
                    axis=-1)                                   # [B, D, L]
    seq = cls.reshape(-1, num_layers, hidden_size)             # row-major "view" -> [B, T, D]
    B = seq.shape[0]
    x_flat = (jnp.transpose(seq, (1, 0, 2))                    # [T, B, D] time-major
              .reshape(num_layers * B, hidden_size)
              .astype(jnp.bfloat16))                           # [T*B, D] bf16 for MXU

    out = pl.pallas_call(
        lstm_last_kernel,
        out_shape=jax.ShapeDtypeStruct((B, hiddendim_lstm), jnp.float32),
        in_specs=[pl.BlockSpec(memory_space=pltpu.MemorySpace.VMEM)] * 4,
        out_specs=pl.BlockSpec(memory_space=pltpu.MemorySpace.VMEM),
        scratch_shapes=[pltpu.VMEM((num_layers * B, 4 * hiddendim_lstm), jnp.float32)],
    )(x_flat, wih_t, whh_t, bias)

    # Dropout in eval mode is the identity.
    return out


def _lstm_pooling_ref(hidden_states, params, num_layers, hidden_size, hiddendim_lstm):
    """Pure-JAX f32 reference of the PyTorch forward (original gate order)."""
    cls = jnp.stack([hidden_states[l][:, 0] for l in range(1, num_layers + 1)], axis=-1)
    seq = cls.reshape(-1, num_layers, hidden_size).astype(jnp.float32)  # [B, T, D]
    B = seq.shape[0]
    Hl = hiddendim_lstm
    w_ih, w_hh = params["w_ih"], params["w_hh"]
    b = params["b_ih"] + params["b_hh"]

    def step(carry, x_t):
        h, c = carry
        gates = x_t @ w_ih.T + h @ w_hh.T + b
        i_g = jax.nn.sigmoid(gates[:, 0 * Hl:1 * Hl])
        f_g = jax.nn.sigmoid(gates[:, 1 * Hl:2 * Hl])
        g_g = jnp.tanh(gates[:, 2 * Hl:3 * Hl])
        o_g = jax.nn.sigmoid(gates[:, 3 * Hl:4 * Hl])
        c_new = f_g * c + i_g * g_g
        h_new = o_g * jnp.tanh(c_new)
        return (h_new, c_new), None

    h0 = jnp.zeros((B, Hl), jnp.float32)
    c0 = jnp.zeros((B, Hl), jnp.float32)
    (h_T, _), _ = lax.scan(step, (h0, c0), jnp.swapaxes(seq, 0, 1))
    return h_T


if __name__ == "__main__":
    # Small shapes consistent with the module's forward.
    num_layers = 4          # number of transformer layers pooled (LSTM seq length)
    hidden_size = 32        # transformer hidden size (LSTM input size)
    hiddendim_lstm = 128    # LSTM hidden size (output dim)
    batch = 2
    seq_len = 8             # transformer sequence length (only token 0 / CLS is used)
    dropout_rate = 0.1      # inference: dropout is identity

    key = jax.random.PRNGKey(0)
    keys = jax.random.split(key, 8)

    # outputs['hidden_states'] stand-in: (num_layers + 1) tensors of [B, S, D]
    hidden_states = [
        jax.random.normal(keys[l % 8], (batch, seq_len, hidden_size),
                          dtype=jnp.float32) * 0.5
        for l in range(num_layers + 1)
    ]

    # Deterministic LSTM parameters (PyTorch nn.LSTM shapes), uniform(-k, k), k = 1/sqrt(H).
    k = 1.0 / jnp.sqrt(jnp.float32(hiddendim_lstm))
    params = {
        "w_ih": jax.random.uniform(keys[4], (4 * hiddendim_lstm, hidden_size),
                                   minval=-k, maxval=k, dtype=jnp.float32),
        "w_hh": jax.random.uniform(keys[5], (4 * hiddendim_lstm, hiddendim_lstm),
                                   minval=-k, maxval=k, dtype=jnp.float32),
        "b_ih": jax.random.uniform(keys[6], (4 * hiddendim_lstm,),
                                   minval=-k, maxval=k, dtype=jnp.float32),
        "b_hh": jax.random.uniform(keys[7], (4 * hiddendim_lstm,),
                                   minval=-k, maxval=k, dtype=jnp.float32),
    }

    # One-time parameter prep (outside the per-call path).
    wih_t, whh_t, bias = prepare_lstm_params(params, hiddendim_lstm)

    out = lstm_pooling_v1_forward(hidden_states, wih_t, whh_t, bias,
                                  num_layers, hidden_size, hiddendim_lstm)
    out = jax.block_until_ready(out)
    assert out.shape == (batch, hiddendim_lstm), out.shape

    ref = jax.block_until_ready(
        _lstm_pooling_ref(hidden_states, params, num_layers, hidden_size, hiddendim_lstm))
    # bf16 matmul inputs (f32 accumulate) -> loosened tolerance vs. the pure-f32 reference.
    max_err = float(jnp.max(jnp.abs(out - ref)))
    assert jnp.allclose(out, ref, atol=2e-2, rtol=2e-2), max_err

    print("KERNEL_OK")
</pallas_src>

<mosaic_0001>
module attributes {stable_mosaic.version = 11 : i64} {
  func.func @lstm_last_kernel(%arg0: memref<8x32xbf16, #tpu.memory_space<vmem>>, %arg1: memref<32x512xbf16, #tpu.memory_space<vmem>>, %arg2: memref<128x512xbf16, #tpu.memory_space<vmem>>, %arg3: memref<1x512xf32, #tpu.memory_space<vmem>>, %arg4: memref<2x128xf32, #tpu.memory_space<vmem>>, %arg5: memref<8x512xf32, #tpu.memory_space<vmem>>) attributes {dimension_semantics = [], scalar_prefetch = 0 : i64, scratch_operands = 1 : i64, tpu.core_type = #tpu.core_type<tc>} {
    %c0 = arith.constant 0 : index
    %c0_0 = arith.constant 0 : index
    %0 = vector.load %arg1[%c0, %c0_0] : memref<32x512xbf16, #tpu.memory_space<vmem>>, vector<32x512xbf16>
    %c0_1 = arith.constant 0 : index
    %c0_2 = arith.constant 0 : index
    %1 = vector.load %arg2[%c0_1, %c0_2] : memref<128x512xbf16, #tpu.memory_space<vmem>>, vector<128x512xbf16>
    %c0_3 = arith.constant 0 : index
    %c0_4 = arith.constant 0 : index
    %2 = vector.load %arg3[%c0_3, %c0_4] : memref<1x512xf32, #tpu.memory_space<vmem>>, vector<1x512xf32>
    %c0_5 = arith.constant 0 : index
    %c0_6 = arith.constant 0 : index
    %3 = vector.load %arg0[%c0_5, %c0_6] : memref<8x32xbf16, #tpu.memory_space<vmem>>, vector<8x32xbf16>
    %cst = arith.constant dense<0.000000e+00> : vector<8x512xf32>
    %4 = tpu.matmul %3, %0, %cst {dimension_numbers = #tpu.dot_dimension_numbers<[1], [0], [0], [1], [0, 0, 1, 1], [], []>} : vector<8x32xbf16>, vector<32x512xbf16>, vector<8x512xf32> -> vector<8x512xf32>
    %5 = vector.broadcast %2 : vector<1x512xf32> to vector<8x512xf32>
    %6 = arith.addf %4, %5 : vector<8x512xf32>
    %c0_7 = arith.constant 0 : index
    %c0_8 = arith.constant 0 : index
    %7 = vector.load %arg5[%c0_7, %c0_8] : memref<8x512xf32, #tpu.memory_space<vmem>>, vector<8x512xf32>
    tpu.vector_store %arg5[%c0_7, %c0_8], %6 {strides = array<i32>} : memref<8x512xf32, #tpu.memory_space<vmem>>, vector<8x512xf32>,
    %c0_9 = arith.constant 0 : index
    %c0_10 = arith.constant 0 : index
    %8 = vector.load %arg5[%c0_9, %c0_10] : memref<8x512xf32, #tpu.memory_space<vmem>>, vector<2x512xf32>
    %9 = vector.extract_strided_slice %8 {offsets = [0, 0], sizes = [2, 384], strides = [1, 1]} : vector<2x512xf32> to vector<2x384xf32>
    %10 = arith.negf %9 : vector<2x384xf32>
    %11 = math.exp %10 : vector<2x384xf32>
    %cst_11 = arith.constant 1.000000e+00 : f32
    %12 = vector.broadcast %cst_11 : f32 to vector<2x384xf32>
    %13 = arith.addf %12, %11 : vector<2x384xf32>
    %14 = arith.divf %12, %13 : vector<2x384xf32>
    %15 = vector.extract_strided_slice %14 {offsets = [0, 0], sizes = [2, 128], strides = [1, 1]} : vector<2x384xf32> to vector<2x128xf32>
    %16 = vector.extract_strided_slice %8 {offsets = [0, 384], sizes = [2, 128], strides = [1, 1]} : vector<2x512xf32> to vector<2x128xf32>
    %17 = math.tanh %16 : vector<2x128xf32>
    %18 = arith.mulf %15, %17 : vector<2x128xf32>
    %19 = vector.extract_strided_slice %14 {offsets = [0, 256], sizes = [2, 128], strides = [1, 1]} : vector<2x384xf32> to vector<2x128xf32>
    %20 = math.tanh %18 : vector<2x128xf32>
    %21 = arith.mulf %19, %20 : vector<2x128xf32>
    %c1_i32 = arith.constant 1 : i32
    %c2_i32 = arith.constant 2 : i32
    %22 = arith.muli %c1_i32, %c2_i32 : i32
    %23 = arith.index_cast %22 : i32 to index
    %c0_12 = arith.constant 0 : index
    %24 = vector.load %arg5[%23, %c0_12] : memref<8x512xf32, #tpu.memory_space<vmem>>, vector<2x512xf32>
    %25 = arith.truncf %21 : vector<2x128xf32> to vector<2x128xbf16>
    %cst_13 = arith.constant dense<0.000000e+00> : vector<2x512xf32>
    %26 = tpu.matmul %25, %1, %cst_13 {dimension_numbers = #tpu.dot_dimension_numbers<[1], [0], [0], [1], [0, 0, 1, 1], [], []>} : vector<2x128xbf16>, vector<128x512xbf16>, vector<2x512xf32> -> vector<2x512xf32>
    %27 = arith.addf %24, %26 : vector<2x512xf32>
    %28 = vector.extract_strided_slice %27 {offsets = [0, 0], sizes = [2, 384], strides = [1, 1]} : vector<2x512xf32> to vector<2x384xf32>
    %29 = arith.negf %28 : vector<2x384xf32>
    %30 = math.exp %29 : vector<2x384xf32>
    %cst_14 = arith.constant 1.000000e+00 : f32
    %31 = vector.broadcast %cst_14 : f32 to vector<2x384xf32>
    %32 = arith.addf %31, %30 : vector<2x384xf32>
    %33 = arith.divf %31, %32 : vector<2x384xf32>
    %34 = vector.extract_strided_slice %27 {offsets = [0, 384], sizes = [2, 128], strides = [1, 1]} : vector<2x512xf32> to vector<2x128xf32>
    %35 = math.tanh %34 : vector<2x128xf32>
    %36 = vector.extract_strided_slice %33 {offsets = [0, 128], sizes = [2, 128], strides = [1, 1]} : vector<2x384xf32> to vector<2x128xf32>
    %37 = arith.mulf %36, %18 : vector<2x128xf32>
    %38 = vector.extract_strided_slice %33 {offsets = [0, 0], sizes = [2, 128], strides = [1, 1]} : vector<2x384xf32> to vector<2x128xf32>
    %39 = arith.mulf %38, %35 : vector<2x128xf32>
    %40 = arith.addf %37, %39 : vector<2x128xf32>
    %41 = vector.extract_strided_slice %33 {offsets = [0, 256], sizes = [2, 128], strides = [1, 1]} : vector<2x384xf32> to vector<2x128xf32>
    %42 = math.tanh %40 : vector<2x128xf32>
    %43 = arith.mulf %41, %42 : vector<2x128xf32>
    %c2_i32_15 = arith.constant 2 : i32
    %c2_i32_16 = arith.constant 2 : i32
    %44 = arith.muli %c2_i32_15, %c2_i32_16 : i32
    %45 = arith.index_cast %44 : i32 to index
    %c0_17 = arith.constant 0 : index
    %46 = vector.load %arg5[%45, %c0_17] : memref<8x512xf32, #tpu.memory_space<vmem>>, vector<2x512xf32>
    %47 = arith.truncf %43 : vector<2x128xf32> to vector<2x128xbf16>
    %cst_18 = arith.constant dense<0.000000e+00> : vector<2x512xf32>
    %48 = tpu.matmul %47, %1, %cst_18 {dimension_numbers = #tpu.dot_dimension_numbers<[1], [0], [0], [1], [0, 0, 1, 1], [], []>} : vector<2x128xbf16>, vector<128x512xbf16>, vector<2x512xf32> -> vector<2x512xf32>
    %49 = arith.addf %46, %48 : vector<2x512xf32>
    %50 = vector.extract_strided_slice %49 {offsets = [0, 0], sizes = [2, 384], strides = [1, 1]} : vector<2x512xf32> to vector<2x384xf32>
    %51 = arith.negf %50 : vector<2x384xf32>
    %52 = math.exp %51 : vector<2x384xf32>
    %cst_19 = arith.constant 1.000000e+00 : f32
    %53 = vector.broadcast %cst_19 : f32 to vector<2x384xf32>
    %54 = arith.addf %53, %52 : vector<2x384xf32>
    %55 = arith.divf %53, %54 : vector<2x384xf32>
    %56 = vector.extract_strided_slice %49 {offsets = [0, 384], sizes = [2, 128], strides = [1, 1]} : vector<2x512xf32> to vector<2x128xf32>
    %57 = math.tanh %56 : vector<2x128xf32>
    %58 = vector.extract_strided_slice %55 {offsets = [0, 128], sizes = [2, 128], strides = [1, 1]} : vector<2x384xf32> to vector<2x128xf32>
    %59 = arith.mulf %58, %40 : vector<2x128xf32>
    %60 = vector.extract_strided_slice %55 {offsets = [0, 0], sizes = [2, 128], strides = [1, 1]} : vector<2x384xf32> to vector<2x128xf32>
    %61 = arith.mulf %60, %57 : vector<2x128xf32>
    %62 = arith.addf %59, %61 : vector<2x128xf32>
    %63 = vector.extract_strided_slice %55 {offsets = [0, 256], sizes = [2, 128], strides = [1, 1]} : vector<2x384xf32> to vector<2x128xf32>
    %64 = math.tanh %62 : vector<2x128xf32>
    %65 = arith.mulf %63, %64 : vector<2x128xf32>
    %c3_i32 = arith.constant 3 : i32
    %c2_i32_20 = arith.constant 2 : i32
    %66 = arith.muli %c3_i32, %c2_i32_20 : i32
    %67 = arith.index_cast %66 : i32 to index
    %c0_21 = arith.constant 0 : index
    %68 = vector.load %arg5[%67, %c0_21] : memref<8x512xf32, #tpu.memory_space<vmem>>, vector<2x512xf32>
    %69 = arith.truncf %65 : vector<2x128xf32> to vector<2x128xbf16>
    %cst_22 = arith.constant dense<0.000000e+00> : vector<2x512xf32>
    %70 = tpu.matmul %69, %1, %cst_22 {dimension_numbers = #tpu.dot_dimension_numbers<[1], [0], [0], [1], [0, 0, 1, 1], [], []>} : vector<2x128xbf16>, vector<128x512xbf16>, vector<2x512xf32> -> vector<2x512xf32>
    %71 = arith.addf %68, %70 : vector<2x512xf32>
    %72 = vector.extract_strided_slice %71 {offsets = [0, 0], sizes = [2, 384], strides = [1, 1]} : vector<2x512xf32> to vector<2x384xf32>
    %73 = arith.negf %72 : vector<2x384xf32>
    %74 = math.exp %73 : vector<2x384xf32>
    %cst_23 = arith.constant 1.000000e+00 : f32
    %75 = vector.broadcast %cst_23 : f32 to vector<2x384xf32>
    %76 = arith.addf %75, %74 : vector<2x384xf32>
    %77 = arith.divf %75, %76 : vector<2x384xf32>
    %78 = vector.extract_strided_slice %71 {offsets = [0, 384], sizes = [2, 128], strides = [1, 1]} : vector<2x512xf32> to vector<2x128xf32>
    %79 = math.tanh %78 : vector<2x128xf32>
    %80 = vector.extract_strided_slice %77 {offsets = [0, 128], sizes = [2, 128], strides = [1, 1]} : vector<2x384xf32> to vector<2x128xf32>
    %81 = arith.mulf %80, %62 : vector<2x128xf32>
    %82 = vector.extract_strided_slice %77 {offsets = [0, 0], sizes = [2, 128], strides = [1, 1]} : vector<2x384xf32> to vector<2x128xf32>
    %83 = arith.mulf %82, %79 : vector<2x128xf32>
    %84 = arith.addf %81, %83 : vector<2x128xf32>
    %85 = vector.extract_strided_slice %77 {offsets = [0, 256], sizes = [2, 128], strides = [1, 1]} : vector<2x384xf32> to vector<2x128xf32>
    %86 = math.tanh %84 : vector<2x128xf32>
    %87 = arith.mulf %85, %86 : vector<2x128xf32>
    %c3_i32_24 = arith.constant 3 : i32
    %c0_25 = arith.constant 0 : index
    %c0_26 = arith.constant 0 : index
    %88 = vector.load %arg4[%c0_25, %c0_26] : memref<2x128xf32, #tpu.memory_space<vmem>>, vector<2x128xf32>
    tpu.vector_store %arg4[%c0_25, %c0_26], %87 {strides = array<i32>} : memref<2x128xf32, #tpu.memory_space<vmem>>, vector<2x128xf32>,
    return
  }
}

</mosaic_0001>

<bundles_post_ra>
// kernel: lstm_pooling_v1_forward.1
= control target key start
LH: loop header
LB: loop body
LE: loop exit
PB: predicated region body
PF: predicated region fallthrough
CT: control target
= control target key end

     0   :  { %9 = vsyncpa [#allocation4], 0  ;;  %s1281_s0 = inlined_call_operand.vmem [shape: bf16[8,32], index: 0, kind: input, shape index: {}]   ;;  %s1282_s1 = inlined_call_operand.vmem [shape: bf16[32,512], index: 1, kind: input, shape index: {}]   ;;  %s1283_s2 = inlined_call_operand.hbm [shape: bf16[128,512], index: 2, kind: input, shape index: {}]   ;;  %s1284_s3 = inlined_call_operand.vmem [shape: f32[1,512], index: 3, kind: input, shape index: {}]   ;;  %s1285_s4 = inlined_call_operand.hbm [shape: f32[2,128], index: 4, kind: output, shape index: {}]  }
   0x1   :  { %10 = vsyncpa [#allocation5], 0  ;;  %s1039_s15 = smov [#allocation3]  }
   0x2   :  { %s20_s16 = sshll.u32 %s1039_s15, 4  ;;  %s21_s16 = int_to_ptr.vmem [resolvable:$true] %s20_s16 }
   0x3   :  { %s1003_s17 = scalar_lea.vmem %s21_s16, 4096  ;;  %p1008_p1 = scmp.lt.s32.totalorder %s21_s16, %s21_s16 }
   0x4   :  { %p1004_p0 = scmp.ne.s32.totalorder %s21_s16, %s1003_s17  ;;  %p1009_p2 = scmp.lt.s32.totalorder %s1003_s17, %s1003_s17 }
   0x6   :  { %p1010_p3 = por %p1009_p2, %p1008_p1 }
   0x8   :  { %p1011_p4 = pnand %p1010_p3, %p1004_p0 }
   0xa   :  { %1014 = shalt.err (!%p1011_p4)
}
   0xb   :  { %s1040_s18 = smov 256   ;;  %s1041_s19 = smov 16  }
   0xc   :  { %26 = dma.hbm_to_vmem [thread:$0]  %s1283_s2, 4096, %s21_s16, [#allocation4], %s1040_s18, %s1040_s18, %s1041_s19  }
   0xd   :  { %1035 = dma.done.wait [#allocation4], 4096  }
   0xe   :  { %1036 = vsyncadd [#allocation4], 4294963200  ;;  %v1042_v0 = vmov 0   ;;  %v875_v1 = vld [vmem:[%s1282_s1 + $0x24] ss:$16 sps:$4 sm:$0xff]   ;;  %vm136_vm0 = vcmask 261120   ;;  %v76_v42 = vlaneseq }
   0xf   :  { %172 = vmatprep.mubr.bf16.mxu0 %v1042_v0  ;;  %213 = vmatprep.mubr.bf16.mxu1 %v1042_v0  ;;  %v877_v2 = vld [vmem:[%s1282_s1 + $0x20] ss:$16 sps:$4 sm:$0xff]   ;;  %v878_v3 = vld [vmem:[%s1282_s1 + $0x4] ss:$16 sps:$4 sm:$0xff]   ;;  %v881_v5 = vld [vmem:[%s1282_s1 + $0x2c] ss:$16 sps:$4 sm:$0xff]  }
  0x10   :  { %152 = vmatprep.subr.bf16.mxu0 %v875_v1  ;;  %v880_v4 = vld [vmem:[%s1282_s1] ss:$16 sps:$4 sm:$0xff]   ;;  %v883_v6 = vld [vmem:[%s1282_s1 + $0x28] ss:$16 sps:$4 sm:$0xff]   ;;  %193 = vmatprep.subr.bf16.mxu1 %v881_v5  ;;  %v884_v8 = vld [vmem:[%s1282_s1 + $0xc] ss:$16 sps:$4 sm:$0xff]  }
  0x11   :  { %153 = vmatpush1.bf16.msra.mxu0 %v877_v2  ;;  %v74_v7 = vld [vmem:[%s1281_s0] sm:$0xf]  ;;  %v886_v9 = vld [vmem:[%s1282_s1 + $0x8] ss:$16 sps:$4 sm:$0xff]   ;;  %194 = vmatpush1.bf16.msra.mxu1 %v883_v6  ;;  %v1105_v11 = vld [vmem:[#allocation3 + $0xe4] ss:$16 sps:$4 sm:$0xff]  }
  0x12   :  { %154 = vmatprep.subr.bf16.mxu0 %v878_v3  ;;  %195 = vmatprep.subr.bf16.mxu1 %v884_v8  ;;  %v1103_v10 = vld [vmem:[#allocation3 + $0xe0] ss:$16 sps:$4 sm:$0xff]   ;;  %v1107_v12 = vld [vmem:[#allocation3 + $0xe8] ss:$16 sps:$4 sm:$0xff]   ;;  %v1109_v13 = vld [vmem:[#allocation3 + $0xec] ss:$16 sps:$4 sm:$0xff]  }
  0x13   :  { %v1111_v14 = vld [vmem:[#allocation3 + $0xc4] ss:$16 sps:$4 sm:$0xff]   ;;  %v1114_v15 = vld [vmem:[#allocation3 + $0xcc] ss:$16 sps:$4 sm:$0xff]   ;;  %v1118_v16 = vld [vmem:[#allocation3 + $0xc0] ss:$16 sps:$4 sm:$0xff]  }
  0x14   :  { %v1122_v17 = vld [vmem:[#allocation3 + $0xc8] ss:$16 sps:$4 sm:$0xff]   ;;  %v1124_v18 = vld [vmem:[#allocation3 + $0xa4] ss:$16 sps:$4 sm:$0xff]   ;;  %v1127_v19 = vld [vmem:[#allocation3 + $0xac] ss:$16 sps:$4 sm:$0xff]  }
  0x15   :  { %155 = vmatpush1.bf16.msra.mxu0 %v880_v4  ;;  %196 = vmatpush1.bf16.msra.mxu1 %v886_v9  ;;  %v1130_v20 = vld [vmem:[#allocation3 + $0xa0] ss:$16 sps:$4 sm:$0xff]   ;;  %v1134_v21 = vld [vmem:[#allocation3 + $0xa8] ss:$16 sps:$4 sm:$0xff]   ;;  %v1136_v22 = vld [vmem:[#allocation3 + $0x84] ss:$16 sps:$4 sm:$0xff]  }
  0x16   :  { %410 = vmatprep.subr.bf16.mxu0 %v1105_v11  ;;  %451 = vmatprep.subr.bf16.mxu1 %v1109_v13  ;;  %v1139_v23 = vld [vmem:[#allocation3 + $0x8c] ss:$16 sps:$4 sm:$0xff]   ;;  %v1142_v24 = vld [vmem:[#allocation3 + $0x80] ss:$16 sps:$4 sm:$0xff]   ;;  %v1146_v25 = vld [vmem:[#allocation3 + $0x88] ss:$16 sps:$4 sm:$0xff]  }
  0x17   :  { %v1148_v26 = vld [vmem:[#allocation3 + $0x64] ss:$16 sps:$4 sm:$0xff]   ;;  %v1151_v27 = vld [vmem:[#allocation3 + $0x6c] ss:$16 sps:$4 sm:$0xff]   ;;  %v1154_v28 = vld [vmem:[#allocation3 + $0x60] ss:$16 sps:$4 sm:$0xff]  }
  0x18   :  { %825 = vmatmul.mubr.msk.bf16.vlgmr.msra.gmra.mxu0 %vm136_vm0, %v74_v7  ;;  %826 = vmatmul.mubr.msk.bf16.vlgmr.msra.gmra.mxu1 %vm136_vm0, %v74_v7  ;;  %v1158_v29 = vld [vmem:[#allocation3 + $0x68] ss:$16 sps:$4 sm:$0xff]   ;;  %v1160_v30 = vld [vmem:[#allocation3 + $0x44] ss:$16 sps:$4 sm:$0xff]   ;;  %v1163_v31 = vld [vmem:[#allocation3 + $0x4c] ss:$16 sps:$4 sm:$0xff]  }
  0x19   :  { %442 = vmatprep.mubr.bf16.mxu0 %v1042_v0  ;;  %483 = vmatprep.mubr.bf16.mxu1 %v1042_v0  ;;  %v1166_v32 = vld [vmem:[#allocation3 + $0x40] ss:$16 sps:$4 sm:$0xff]   ;;  %v1170_v33 = vld [vmem:[#allocation3 + $0x48] ss:$16 sps:$4 sm:$0xff]   ;;  %v1172_v34 = vld [vmem:[#allocation3 + $0x24] ss:$16 sps:$4 sm:$0xff]  }
  0x1a   :  { %411 = vmatpush1.bf16.msra.mxu0 %v1103_v10  ;;  %452 = vmatpush1.bf16.msra.mxu1 %v1107_v12  ;;  %v1175_v35 = vld [vmem:[#allocation3 + $0x2c] ss:$16 sps:$4 sm:$0xff]   ;;  %v1178_v36 = vld [vmem:[#allocation3 + $0x20] ss:$16 sps:$4 sm:$0xff]   ;;  %v1182_v37 = vld [vmem:[#allocation3 + $0x28] ss:$16 sps:$4 sm:$0xff]  }
  0x1b   :  { %412 = vmatprep.subr.bf16.mxu0 %v1111_v14  ;;  %453 = vmatprep.subr.bf16.mxu1 %v1114_v15  ;;  %v1184_v38 = vld [vmem:[#allocation3 + $0x4] ss:$16 sps:$4 sm:$0xff]   ;;  %v1187_v39 = vld [vmem:[#allocation3 + $0xc] ss:$16 sps:$4 sm:$0xff]   ;;  %v1190_v40 = vld [vmem:[#allocation3] ss:$16 sps:$4 sm:$0xff]  }
  0x1c   :  { %v1194_v41 = vld [vmem:[#allocation3 + $0x8] ss:$16 sps:$4 sm:$0xff]   ;;  %v77_v43 = vshrl.u32 %v76_v42, 7  ;;  %v73_v45 = vld [vmem:[%s1284_s3] sm:$0xf]  ;;  %s1043_s3 = smov [#allocation6]  }
  0x1d   :  { %s808_s13 = sshll.u32 %s1043_s3, 4  ;;  %s809_s13 = int_to_ptr.vmem [resolvable:$true] %s808_s13 }
  0x1e   :  { %413 = vmatpush1.bf16.msra.mxu0 %v1118_v16  ;;  %454 = vmatpush1.bf16.msra.mxu1 %v1122_v17  ;;  %v78_v44 = vsub.s32 0, %v77_v43  ;;  %v82_v46 = vsub.s32 1, %v77_v43  ;;  %v86_v47 = vsub.s32 2, %v77_v43  ;;  %v90_v49 = vsub.s32 3, %v77_v43  ;;  %s1015_s14 = scalar_lea.vmem %s809_s13, 32  ;;  %p1020_p6 = scmp.lt.s32.totalorder %s809_s13, %s809_s13 }
  0x1f   :  { %414 = vmatprep.subr.bf16.mxu0 %v1124_v18  ;;  %455 = vmatprep.subr.bf16.mxu1 %v1127_v19  ;;  %p1016_p5 = scmp.ne.s32.totalorder %s809_s13, %s1015_s14  ;;  %p1021_p7 = scmp.lt.s32.totalorder %s1015_s14, %s1015_s14 }
  0x20   :  { %v79_v48 = vrot.slane %v73_v45, %v78_v44  ;;  %v83_v50 = vrot.slane %v73_v45, %v82_v46  ;;  %v87_v52 = vrot.slane %v73_v45, %v86_v47  ;;  %v91_v55 = vrot.slane %v73_v45, %v90_v49 }
  0x21   :  { %p1022_p8 = por %p1021_p7, %p1020_p6 }
  0x22   :  { %415 = vmatpush1.bf16.msra.mxu0 %v1130_v20  ;;  %456 = vmatpush1.bf16.msra.mxu1 %v1134_v21 }
  0x23   :  { %416 = vmatprep.subr.bf16.mxu0 %v1136_v22  ;;  %457 = vmatprep.subr.bf16.mxu1 %v1139_v23  ;;  %p1023_p9 = pnand %p1022_p8, %p1016_p5 }
  0x26   :  { %417 = vmatpush1.bf16.msra.mxu0 %v1142_v24  ;;  %458 = vmatpush1.bf16.msra.mxu1 %v1146_v25 }
  0x27   :  { %418 = vmatprep.subr.bf16.mxu0 %v1148_v26  ;;  %459 = vmatprep.subr.bf16.mxu1 %v1151_v27 }
  0x2a   :  { %419 = vmatpush1.bf16.msra.mxu0 %v1154_v28  ;;  %460 = vmatpush1.bf16.msra.mxu1 %v1158_v29 }
  0x2b   :  { %420 = vmatprep.subr.bf16.mxu0 %v1160_v30  ;;  %461 = vmatprep.subr.bf16.mxu1 %v1163_v31 }
  0x2e   :  { %421 = vmatpush1.bf16.msra.mxu0 %v1166_v32  ;;  %462 = vmatpush1.bf16.msra.mxu1 %v1170_v33 }
  0x2f   :  { %422 = vmatprep.subr.bf16.mxu0 %v1172_v34  ;;  %463 = vmatprep.subr.bf16.mxu1 %v1175_v35 }
  0x32   :  { %423 = vmatpush1.bf16.msra.mxu0 %v1178_v36  ;;  %464 = vmatpush1.bf16.msra.mxu1 %v1182_v37 }
  0x33   :  { %424 = vmatprep.subr.bf16.mxu0 %v1184_v38  ;;  %465 = vmatprep.subr.bf16.mxu1 %v1187_v39 }
  0x36   :  { %425 = vmatpush1.bf16.msra.mxu0 %v1190_v40  ;;  %466 = vmatpush1.bf16.msra.mxu1 %v1194_v41 }
  0x37   :  { %543 = vmatprep.subr.bf16.mxu0 %v1105_v11  ;;  %584 = vmatprep.subr.bf16.mxu1 %v1109_v13 }
  0xd8   :  { %v174_v51 = vpop.f32.mrf.mxu0  ;;  %v215_v57 = vpop.f32.mrf.mxu1 }
  0xd9   :  { %v175_v53 = vadd.f32 %v174_v51, %v79_v48  ;;  %v216_v59 = vadd.f32 %v215_v57, %v87_v52 }
  0xda   :  { %v176_v54 = vpop.f32.mrf.mxu0  ;;  %v217_v60 = vpop.f32.mrf.mxu1 }
  0xdb   :  { %222 = vst [vmem:[#allocation2 + $0x10] sm:$0xff] %v175_v53  ;;  %v177_v56 = vadd.f32 %v176_v54, %v83_v50  ;;  %224 = vst [vmem:[#allocation2 + $0x18] sm:$0xff] %v216_v59  ;;  %v218_v62 = vadd.f32 %v217_v60, %v91_v55 }
  0xdc   :  { %v178_v58 = vpop.f32.mrf.mxu0  ;;  %v219_v63 = vpop.f32.mrf.mxu1 }
  0xdd   :  { %223 = vst [vmem:[#allocation2] sm:$0xff] %v177_v56  ;;  %225 = vst [vmem:[#allocation2 + $0x8] sm:$0xff] %v218_v62 }
  0xde   :  { %v179_v61 = vpop.f32.mrf.mxu0  ;;  %v220_v1 = vpop.f32.mrf.mxu1 }
  0xe2   :  { %v226_v2 = vld [vmem:[#allocation2 + $0x10] sm:$0x3]  ;;  %v227_v4 = vld [vmem:[#allocation2 + $0x18] sm:$0x3]  ;;  %v245_v53 = vld [vmem:[#allocation2 + $0x10] sm:$0xc] }
  0xe3   :  { %v827_v3 = vmul.f32 -1.442695, %v226_v2  ;;  %v828_v5 = vmul.f32 -1.442695, %v227_v4 }
  0xe4   :  { %v228_v6 = vld [vmem:[#allocation2 + $0x8] sm:$0x3]  ;;  %v246_v58 = vld [vmem:[#allocation2] sm:$0xc] }
  0xe5   :  { %935 = vpow2.f32 %v827_v3 }
  0xe6   :  { %937 = vpow2.f32 %v828_v5 }
  0xe7   :  { %939 = vtanh.f32 %v228_v6  ;;  %v248_v6 = vld [vmem:[#allocation2 + $0x8] sm:$0xc] }
  0xf2   :  { %v936_v7 = vpop.eup %935 }
  0xf3   :  { %v235_v8 = vadd.f32 1.0, %v936_v7  ;;  %v938_v9 = vpop.eup %937 }
  0xf4   :  { %v236_v42 = vadd.f32 1.0, %v938_v9  ;;  %v940_v43 = vpop.eup %939 }
  0xf5   :  { %941 = vrcp.f32 %v235_v8 }
  0xf6   :  { %943 = vrcp.f32 %v236_v42 }
 0x102   :  { %v942_v44 = vpop.eup %941 }
 0x103   :  { %v1204_v45 = vmul.f32 %v942_v44, %v940_v43  ;;  %v944_v46 = vpop.eup %943 }
 0x105   :  { %945 = vtanh.f32 %v1204_v45 }
 0x112   :  { %v946_v47 = vpop.eup %945 }
 0x113   :  { %v244_v48 = vmul.f32 %v946_v47, %v944_v46 }
 0x115   :  { %v249_v49 = vpack.c.bf16 %v244_v48, %v244_v48  ;;  %v528_v48 = vrot.slane %v1204_v45, 6 }
 0x117   :  { %443 = vmatmul.mubr.bf16.vlgmr.msra.gmra.mxu0 %v249_v49  ;;  %484 = vmatmul.mubr.bf16.vlgmr.msra.gmra.mxu1 %v249_v49 }
 0x118   :  { %544 = vmatpush1.bf16.msra.mxu0 %v1103_v10  ;;  %585 = vmatpush1.bf16.msra.mxu1 %v1107_v12 }
 0x119   :  { %545 = vmatprep.subr.bf16.mxu0 %v1111_v14  ;;  %586 = vmatprep.subr.bf16.mxu1 %v1114_v15 }
 0x11a   :  { %575 = vmatprep.mubr.bf16.mxu0 %v1042_v0  ;;  %616 = vmatprep.mubr.bf16.mxu1 %v1042_v0 }
 0x11c   :  { %546 = vmatpush1.bf16.msra.mxu0 %v1118_v16  ;;  %587 = vmatpush1.bf16.msra.mxu1 %v1122_v17 }
 0x11d   :  { %547 = vmatprep.subr.bf16.mxu0 %v1124_v18  ;;  %588 = vmatprep.subr.bf16.mxu1 %v1127_v19 }
 0x120   :  { %548 = vmatpush1.bf16.msra.mxu0 %v1130_v20  ;;  %589 = vmatpush1.bf16.msra.mxu1 %v1134_v21 }
 0x121   :  { %549 = vmatprep.subr.bf16.mxu0 %v1136_v22  ;;  %590 = vmatprep.subr.bf16.mxu1 %v1139_v23 }
 0x124   :  { %550 = vmatpush1.bf16.msra.mxu0 %v1142_v24  ;;  %591 = vmatpush1.bf16.msra.mxu1 %v1146_v25 }
 0x125   :  { %551 = vmatprep.subr.bf16.mxu0 %v1148_v26  ;;  %592 = vmatprep.subr.bf16.mxu1 %v1151_v27 }
 0x128   :  { %552 = vmatpush1.bf16.msra.mxu0 %v1154_v28  ;;  %593 = vmatpush1.bf16.msra.mxu1 %v1158_v29 }
 0x129   :  { %553 = vmatprep.subr.bf16.mxu0 %v1160_v30  ;;  %594 = vmatprep.subr.bf16.mxu1 %v1163_v31 }
 0x12c   :  { %554 = vmatpush1.bf16.msra.mxu0 %v1166_v32  ;;  %595 = vmatpush1.bf16.msra.mxu1 %v1170_v33 }
 0x12d   :  { %555 = vmatprep.subr.bf16.mxu0 %v1172_v34  ;;  %596 = vmatprep.subr.bf16.mxu1 %v1175_v35 }
 0x130   :  { %556 = vmatpush1.bf16.msra.mxu0 %v1178_v36  ;;  %597 = vmatpush1.bf16.msra.mxu1 %v1182_v37 }
 0x131   :  { %557 = vmatprep.subr.bf16.mxu0 %v1184_v38  ;;  %598 = vmatprep.subr.bf16.mxu1 %v1187_v39 }
 0x134   :  { %558 = vmatpush1.bf16.msra.mxu0 %v1190_v40  ;;  %599 = vmatpush1.bf16.msra.mxu1 %v1194_v41 }
 0x135   :  { %676 = vmatprep.subr.bf16.mxu0 %v1105_v11  ;;  %717 = vmatprep.subr.bf16.mxu1 %v1109_v13  ;;  %v247_v13 = vld [vmem:[#allocation2 + $0x18] sm:$0xc] }
 0x1d7   :  { %v444_v50 = vpop.f32.mrf.mxu0  ;;  %v485_v51 = vpop.f32.mrf.mxu1 }
 0x1d8   :  { %v496_v52 = vrot.slane %v444_v50, 6  ;;  %v498_v11 = vrot.slane %v485_v51, 6 }
 0x1d9   :  { %v446_v54 = vpop.f32.mrf.mxu0  ;;  %v487_v55 = vpop.f32.mrf.mxu1 }
 0x1da   :  { %v504_v56 = vadd.f32 %v496_v52, %v245_v53  ;;  %v497_v57 = vrot.slane %v446_v54, 6  ;;  %v506_v3 = vadd.f32 %v498_v11, %v247_v13  ;;  %v499_v4 = vrot.slane %v487_v55, 6 }
 0x1db   :  { %v448_v59 = vpop.f32.mrf.mxu0  ;;  %v489_v60 = vpop.f32.mrf.mxu1 }
 0x1dc   :  { %v861_v61 = vmul.f32 -1.442695, %v504_v56  ;;  %v505_v62 = vadd.f32 %v497_v57, %v246_v58  ;;  %v863_v5 = vmul.f32 -1.442695, %v506_v3  ;;  %v507_v8 = vadd.f32 %v499_v4, %v248_v6  ;;  %v668_v6 = vld [vmem:[#allocation2 + $0x10] sm:$0xc0] }
 0x1dd   :  { %v449_v63 = vpop.f32.mrf.mxu0  ;;  %v490_v1 = vpop.f32.mrf.mxu1 }
 0x1de   :  { %947 = vpow2.f32 %v861_v61  ;;  %v862_v2 = vmul.f32 -1.442695, %v505_v62 }
 0x1e0   :  { %949 = vpow2.f32 %v862_v2 }
 0x1e1   :  { %951 = vpow2.f32 %v863_v5 }
 0x1eb   :  { %v948_v7 = vpop.eup %947 }
 0x1ec   :  { %v517_v9 = vadd.f32 1.0, %v948_v7 }
 0x1ed   :  { %v950_v42 = vpop.eup %949 }
 0x1ee   :  { %953 = vrcp.f32 %v517_v9  ;;  %v518_v43 = vadd.f32 1.0, %v950_v42  ;;  %v952_v44 = vpop.eup %951 }
 0x1ef   :  { %955 = vtanh.f32 %v507_v8  ;;  %v519_v50 = vadd.f32 1.0, %v952_v44 }
 0x1f0   :  { %957 = vrcp.f32 %v518_v43  ;;  %v669_v43 = vld [vmem:[#allocation2] sm:$0xc0] }
 0x1f1   :  { %959 = vrcp.f32 %v519_v50 }
 0x1fb   :  { %v954_v46 = vpop.eup %953 }
 0x1fc   :  { %v956_v47 = vpop.eup %955 }
 0x1fd   :  { %v958_v49 = vpop.eup %957  ;;  %v531_v52 = vmul.f32 %v956_v47, %v954_v46 }
 0x1fe   :  { %v530_v51 = vmul.f32 %v958_v49, %v528_v48  ;;  %v960_v54 = vpop.eup %959 }
 0x200   :  { %v1242_v53 = vadd.f32 %v531_v52, %v530_v51 }
 0x202   :  { %961 = vtanh.f32 %v1242_v53 }
 0x20f   :  { %v962_v55 = vpop.eup %961 }
 0x210   :  { %v534_v56 = vmul.f32 %v962_v55, %v960_v54 }
 0x212   :  { %v539_v57 = vpack.c.bf16 %v534_v56, %v534_v56 }
 0x214   :  { %v541_v58 = vrot.slane %v539_v57, 1  ;;  %v671_v57 = vld [vmem:[#allocation2 + $0x8] sm:$0xc0] }
 0x216   :  { %576 = vmatmul.mubr.bf16.vlgmr.msra.gmra.mxu0 %v541_v58  ;;  %617 = vmatmul.mubr.bf16.vlgmr.msra.gmra.mxu1 %v541_v58 }
 0x217   :  { %677 = vmatpush1.bf16.msra.mxu0 %v1103_v10  ;;  %718 = vmatpush1.bf16.msra.mxu1 %v1107_v12 }
 0x218   :  { %678 = vmatprep.subr.bf16.mxu0 %v1111_v14  ;;  %719 = vmatprep.subr.bf16.mxu1 %v1114_v15  ;;  %v535_v14 = vld [vmem:[#allocation2 + $0x10] sm:$0x30] }
 0x219   :  { %708 = vmatprep.mubr.bf16.mxu0 %v1042_v0  ;;  %749 = vmatprep.mubr.bf16.mxu1 %v1042_v0 }
 0x21b   :  { %679 = vmatpush1.bf16.msra.mxu0 %v1118_v16  ;;  %720 = vmatpush1.bf16.msra.mxu1 %v1122_v17 }
 0x21c   :  { %680 = vmatprep.subr.bf16.mxu0 %v1124_v18  ;;  %721 = vmatprep.subr.bf16.mxu1 %v1127_v19  ;;  %v536_v19 = vld [vmem:[#allocation2] sm:$0x30] }
 0x21f   :  { %681 = vmatpush1.bf16.msra.mxu0 %v1130_v20  ;;  %722 = vmatpush1.bf16.msra.mxu1 %v1134_v21 }
 0x220   :  { %682 = vmatprep.subr.bf16.mxu0 %v1136_v22  ;;  %723 = vmatprep.subr.bf16.mxu1 %v1139_v23 }
 0x223   :  { %683 = vmatpush1.bf16.msra.mxu0 %v1142_v24  ;;  %724 = vmatpush1.bf16.msra.mxu1 %v1146_v25 }
 0x224   :  { %684 = vmatprep.subr.bf16.mxu0 %v1148_v26  ;;  %725 = vmatprep.subr.bf16.mxu1 %v1151_v27 }
 0x227   :  { %685 = vmatpush1.bf16.msra.mxu0 %v1154_v28  ;;  %726 = vmatpush1.bf16.msra.mxu1 %v1158_v29  ;;  %v537_v28 = vld [vmem:[#allocation2 + $0x18] sm:$0x30] }
 0x228   :  { %686 = vmatprep.subr.bf16.mxu0 %v1160_v30  ;;  %727 = vmatprep.subr.bf16.mxu1 %v1163_v31 }
 0x22b   :  { %687 = vmatpush1.bf16.msra.mxu0 %v1166_v32  ;;  %728 = vmatpush1.bf16.msra.mxu1 %v1170_v33  ;;  %v538_v32 = vld [vmem:[#allocation2 + $0x8] sm:$0x30] }
 0x22c   :  { %688 = vmatprep.subr.bf16.mxu0 %v1172_v34  ;;  %729 = vmatprep.subr.bf16.mxu1 %v1175_v35 }
 0x22f   :  { %689 = vmatpush1.bf16.msra.mxu0 %v1178_v36  ;;  %730 = vmatpush1.bf16.msra.mxu1 %v1182_v37 }
 0x230   :  { %690 = vmatprep.subr.bf16.mxu0 %v1184_v38  ;;  %731 = vmatprep.subr.bf16.mxu1 %v1187_v39 }
 0x233   :  { %691 = vmatpush1.bf16.msra.mxu0 %v1190_v40  ;;  %732 = vmatpush1.bf16.msra.mxu1 %v1194_v41  ;;  %v661_v41 = vrot.slane %v1242_v53, 6  ;;  %v670_v53 = vld [vmem:[#allocation2 + $0x18] sm:$0xc0] }
 0x2d6   :  { %v577_v0 = vpop.f32.mrf.mxu0  ;;  %v618_v10 = vpop.f32.mrf.mxu1 }
 0x2d7   :  { %v629_v12 = vrot.slane %v577_v0, 4  ;;  %v631_v27 = vrot.slane %v618_v10, 4 }
 0x2d8   :  { %v579_v15 = vpop.f32.mrf.mxu0  ;;  %v620_v16 = vpop.f32.mrf.mxu1 }
 0x2d9   :  { %v637_v17 = vadd.f32 %v629_v12, %v535_v14  ;;  %v630_v18 = vrot.slane %v579_v15, 4  ;;  %v639_v29 = vadd.f32 %v631_v27, %v537_v28  ;;  %v632_v30 = vrot.slane %v620_v16, 4 }
 0x2da   :  { %v581_v20 = vpop.f32.mrf.mxu0  ;;  %v622_v21 = vpop.f32.mrf.mxu1 }
 0x2db   :  { %v864_v22 = vmul.f32 -1.442695, %v637_v17  ;;  %v638_v23 = vadd.f32 %v630_v18, %v536_v19  ;;  %v866_v31 = vmul.f32 -1.442695, %v639_v29  ;;  %v640_v34 = vadd.f32 %v632_v30, %v538_v32 }
 0x2dc   :  { %v582_v24 = vpop.f32.mrf.mxu0  ;;  %v623_v25 = vpop.f32.mrf.mxu1 }
 0x2dd   :  { %963 = vpow2.f32 %v864_v22  ;;  %v865_v26 = vmul.f32 -1.442695, %v638_v23 }
 0x2df   :  { %965 = vpow2.f32 %v865_v26 }
 0x2e0   :  { %967 = vpow2.f32 %v866_v31 }
 0x2ea   :  { %v964_v33 = vpop.eup %963 }
 0x2eb   :  { %v650_v35 = vadd.f32 1.0, %v964_v33 }
 0x2ec   :  { %v966_v36 = vpop.eup %965 }
 0x2ed   :  { %969 = vrcp.f32 %v650_v35  ;;  %v651_v37 = vadd.f32 1.0, %v966_v36  ;;  %v968_v38 = vpop.eup %967 }
 0x2ee   :  { %971 = vtanh.f32 %v640_v34  ;;  %v652_v59 = vadd.f32 1.0, %v968_v38 }
 0x2ef   :  { %973 = vrcp.f32 %v651_v37 }
 0x2f0   :  { %975 = vrcp.f32 %v652_v59 }
 0x2fa   :  { %v970_v39 = vpop.eup %969 }
 0x2fb   :  { %v972_v40 = vpop.eup %971 }
 0x2fc   :  { %v974_v45 = vpop.eup %973  ;;  %v664_v61 = vmul.f32 %v972_v40, %v970_v39 }
 0x2fd   :  { %v663_v60 = vmul.f32 %v974_v45, %v661_v41  ;;  %v976_v63 = vpop.eup %975 }
 0x2ff   :  { %v665_v62 = vadd.f32 %v664_v61, %v663_v60 }
 0x301   :  { %977 = vtanh.f32 %v665_v62  ;;  %v794_v18 = vrot.slane %v665_v62, 6 }
 0x30e   :  { %v978_v1 = vpop.eup %977 }
 0x30f   :  { %v667_v2 = vmul.f32 %v978_v1, %v976_v63 }
 0x311   :  { %v672_v11 = vpack.c.bf16 %v667_v2, %v667_v2 }
 0x313   :  { %v674_v13 = vrot.slane %v672_v11, 2 }
 0x315   :  { %709 = vmatmul.mubr.bf16.vlgmr.msra.gmra.mxu0 %v674_v13  ;;  %750 = vmatmul.mubr.bf16.vlgmr.msra.gmra.mxu1 %v674_v13 }
 0x3d5   :  { %v710_v3 = vpop.f32.mrf.mxu0  ;;  %v751_v4 = vpop.f32.mrf.mxu1 }
 0x3d6   :  { %v762_v5 = vrot.slane %v710_v3, 2  ;;  %v764_v52 = vrot.slane %v751_v4, 2 }
 0x3d7   :  { %v712_v7 = vpop.f32.mrf.mxu0  ;;  %v753_v8 = vpop.f32.mrf.mxu1 }
 0x3d8   :  { %v770_v9 = vadd.f32 %v762_v5, %v668_v6  ;;  %v763_v42 = vrot.slane %v712_v7, 2  ;;  %v772_v54 = vadd.f32 %v764_v52, %v670_v53  ;;  %v765_v55 = vrot.slane %v753_v8, 2 }
 0x3d9   :  { %v714_v44 = vpop.f32.mrf.mxu0  ;;  %v755_v46 = vpop.f32.mrf.mxu1 }
 0x3da   :  { %v867_v47 = vmul.f32 -1.442695, %v770_v9  ;;  %v771_v48 = vadd.f32 %v763_v42, %v669_v43  ;;  %v869_v56 = vmul.f32 -1.442695, %v772_v54  ;;  %v773_v0 = vadd.f32 %v765_v55, %v671_v57 }
 0x3db   :  { %v715_v49 = vpop.f32.mrf.mxu0  ;;  %v756_v50 = vpop.f32.mrf.mxu1 }
 0x3dc   :  { %979 = vpow2.f32 %v867_v47  ;;  %v868_v51 = vmul.f32 -1.442695, %v771_v48 }
 0x3de   :  { %981 = vpow2.f32 %v868_v51 }
 0x3df   :  { %983 = vpow2.f32 %v869_v56 }
 0x3e9   :  { %v980_v58 = vpop.eup %979 }
 0x3ea   :  { %v783_v10 = vadd.f32 1.0, %v980_v58 }
 0x3eb   :  { %v982_v12 = vpop.eup %981 }
 0x3ec   :  { %985 = vrcp.f32 %v783_v10  ;;  %v784_v14 = vadd.f32 1.0, %v982_v12  ;;  %v984_v15 = vpop.eup %983 }
 0x3ed   :  { %987 = vtanh.f32 %v773_v0  ;;  %v785_v20 = vadd.f32 1.0, %v984_v15 }
 0x3ee   :  { %989 = vrcp.f32 %v784_v14 }
 0x3ef   :  { %991 = vrcp.f32 %v785_v20 }
 0x3f9   :  { %v986_v16 = vpop.eup %985 }
 0x3fa   :  { %v988_v17 = vpop.eup %987 }
 0x3fb   :  { %v990_v19 = vpop.eup %989  ;;  %v797_v21 = vmul.f32 %v988_v17, %v986_v16 }
 0x3fc   :  { %v796_v22 = vmul.f32 %v990_v19, %v794_v18  ;;  %v992_v24 = vpop.eup %991 }
 0x3fe   :  { %v798_v23 = vadd.f32 %v797_v21, %v796_v22 }
 0x400   :  { %993 = vtanh.f32 %v798_v23 }
 0x40d   :  { %v994_v25 = vpop.eup %993 }
 0x40e   :  { %v800_v26 = vmul.f32 %v994_v25, %v992_v24 }
 0x410   :  { %801 = vst [vmem:[#allocation6 - $0x6] sm:$0xc0] %v800_v26 }
 0x411   :  { %1026 = shalt.err (!%p1023_p9)
}
 0x412   :  { %811 = dma.vmem_to_hbm [thread:$0]  %s809_s13, 32, %s1285_s4, [#allocation5]  }
 0x413   :  { %1037 = dma.done.wait [#allocation5], 32  }
 0x414   :  { %1038 = vsyncadd [#allocation5], 4294967264 }
 0x415   :  { %815 = vsyncpa [#allocation4], 1 }
 0x416   :  { %816 = vsyncpa [#allocation5], 1 }

</bundles_post_ra>
